<compile_context>
chip_gen: v5e
topology: v5e:2x2
jax: 0.10.0
libtpu: 0.0.40
codegen_flags: <defaults>
</compile_context>

<pallas_src>
import functools

import jax
import jax.numpy as jnp
from jax import lax
from jax.experimental import pallas as pl
from jax.experimental.pallas import tpu as pltpu


def _self_frame_attention_kernel(q_ref, k_ref, v_ref, o_ref, *,
                                 scale, tk, exp_dtype):
    """One (batch, q-tile) grid point.

    q_ref: (Ck, TQ)    Q tile, channel-major, lane-dense on TQ
    k_ref: (Ck, HW)    full K for this batch, resident in VMEM
    v_ref: (Cv+1, HW)  full V for this batch; last row is all-ones (row-sum trick)
    o_ref: (Cv, TQ)
    """
    _, tq = q_ref.shape
    _, hw = k_ref.shape
    cv1 = v_ref.shape[0]
    num_kv = hw // tk

    q = q_ref[...]
    if scale is not None:
        q = q * scale  # hoisted: once per q tile, not once per kv step

    def body(i, carry):
        m_prev, acc_prev = carry                      # (1,tq) f32, (Cv+1,tq) f32
        start = pl.multiple_of(i * tk, tk)
        k = k_ref[:, pl.ds(start, tk)]                # (Ck, tk)
        v = v_ref[:, pl.ds(start, tk)]                # (Cv+1, tk)

        # scores[kk, qq] = sum_c K[c, kk] * Q[c, qq]  -> (tk, tq) on the MXU.
        # (Kept on the MXU on purpose: vector-extended slot has slack here.)
        s = lax.dot_general(k, q, dimension_numbers=(((0,), (0,)), ((), ())),
                            preferred_element_type=jnp.float32)

        m_new = jnp.maximum(m_prev, jnp.max(s, axis=0, keepdims=True))  # (1,tq)
        alpha = jnp.exp(m_prev - m_new)                                 # f32
        p = jnp.exp((s - m_new).astype(exp_dtype))    # (tk, tq), unnormalized

        # One MXU dot yields both P@V (rows :Cv) and sum(P) (last row), because
        # the last row of v is all ones.
        pv = lax.dot_general(v.astype(p.dtype), p,
                             dimension_numbers=(((1,), (0,)), ((), ())),
                             preferred_element_type=jnp.float32)        # (Cv+1,tq)
        acc_new = alpha * acc_prev + pv
        return m_new, acc_new

    m0 = jnp.full((1, tq), -jnp.inf, dtype=jnp.float32)
    acc0 = jnp.zeros((cv1, tq), dtype=jnp.float32)
    _, acc_f = lax.fori_loop(0, num_kv, body, (m0, acc0),
                             unroll=(num_kv <= 8))

    l = acc_f[cv1 - 1:, :]                            # (1, tq) softmax denominator
    inv_l = pl.reciprocal(l, approx=False)            # once per q tile -> exact
    o_ref[...] = (acc_f[:cv1 - 1, :] * inv_l).astype(o_ref.dtype)


def _choose_tile(hw, max_tile):
    """Largest multiple of 128 <= max_tile that divides hw, else full hw."""
    if hw <= max_tile:
        return hw
    t = (max_tile // 128) * 128
    while t >= 128:
        if hw % t == 0:
            return t
        t -= 128
    return hw


def _device_kind():
    try:
        return jax.devices()[0].device_kind.lower()
    except Exception:
        return ""


def self_frame_attention(query_query, query_key, query_value,
                         matmul_norm=False, tq=None, tk=None, exp_dtype=None):
    """Pallas equivalent of SelfFrameAttention.forward.

    Args:
      query_query: (B, Ck, H, W)
      query_key:   (B, Ck, H, W)
      query_value: (B, Cv, H, W)
    Returns:
      memory:      (B, Cv, H, W)
    """
    B, Ck, H, W = query_query.shape
    _, Cv, _, _ = query_value.shape
    HW = H * W

    # Channel-major sequence layout: pure reshapes, no transposes.
    q = query_query.reshape(B, Ck, HW)                # (B, Ck, HW)
    k = query_key.reshape(B, Ck, HW)                  # (B, Ck, HW)
    v = query_value.reshape(B, Cv, HW)                # (B, Cv, HW)
    # Ones-row trick: one MXU dot produces P@V and the softmax denominator.
    v_aug = jnp.concatenate(
        [v, jnp.ones((B, 1, HW), dtype=v.dtype)], axis=1)   # (B, Cv+1, HW)

    kind = _device_kind()
    if exp_dtype is None:
        # bf16 EUP/VPU exists on v6e / v7x; keep f32 exp on v5e and older.
        exp_dtype = jnp.bfloat16 if ("v6" in kind or "v7" in kind) else jnp.float32

    if tq is None:
        tq = _choose_tile(HW, 1024)
        # Megacore: try to give the parallel grid at least 2 steps (v7x: 2 TCs).
        if B * (HW // tq) < 2 and HW >= 256:
            tq = _choose_tile(HW, max(128, tq // 2))
    if tk is None:
        tk = _choose_tile(HW, 512)
    assert HW % tq == 0 and HW % tk == 0, (HW, tq, tk)

    scale = (Ck ** -0.5) if matmul_norm else None
    kernel = functools.partial(_self_frame_attention_kernel,
                               scale=scale, tk=tk, exp_dtype=exp_dtype)

    grid = (B, HW // tq)

    # VMEM budget: double-buffered K/V/Q/out blocks + ~3 live (tk,tq) f32
    # intermediates (s, p, cast copy) + small carries.  v7x: 64 MiB physical.
    est = 4 * (2 * Ck * HW + 2 * (Cv + 1) * HW + 2 * Ck * tq + 2 * Cv * tq
               + 3 * tq * tk + 8 * tq)
    cap = (48 << 20) if "v7" in kind else (100 << 20)
    vmem_limit = int(min(max(2 * est, 32 << 20), cap))

    itemsize = jnp.dtype(query_query.dtype).itemsize
    cost = pl.CostEstimate(
        flops=2 * B * HW * HW * (Ck + Cv + 1),
        transcendentals=B * HW * HW,
        # K/V resident per batch (block index constant across q tiles) -> one read.
        bytes_accessed=(q.size + k.size + v_aug.size + B * Cv * HW) * itemsize,
    )

    out = pl.pallas_call(
        kernel,
        out_shape=jax.ShapeDtypeStruct((B, Cv, HW), query_value.dtype),
        grid_spec=pltpu.PrefetchScalarGridSpec(
            num_scalar_prefetch=0,
            grid=grid,
            in_specs=[
                pl.BlockSpec((None, Ck, tq), lambda b, qi: (b, 0, qi)),
                pl.BlockSpec((None, Ck, HW), lambda b, qi: (b, 0, 0)),
                pl.BlockSpec((None, Cv + 1, HW), lambda b, qi: (b, 0, 0)),
            ],
            out_specs=pl.BlockSpec((None, Cv, tq), lambda b, qi: (b, 0, qi)),
        ),
        compiler_params=pltpu.CompilerParams(
            dimension_semantics=("parallel", "parallel"),
            vmem_limit_bytes=vmem_limit,
        ),
        cost_estimate=cost,
    )(q, k, v_aug)

    return out.reshape(B, Cv, H, W)


def _reference(query_query, query_key, query_value, matmul_norm=False):
    B, Ck, H, W = query_query.shape
    _, Cv, _, _ = query_value.shape
    HW = H * W
    q = query_query.reshape(B, Ck, HW).transpose(0, 2, 1)
    k = query_key.reshape(B, Ck, HW)
    a = jnp.einsum("bqc,bck->bqk", q, k)
    if matmul_norm:
        a = (Ck ** -0.5) * a
    a = jax.nn.softmax(a, axis=-1)
    v = query_value.reshape(B, Cv, HW).transpose(0, 2, 1)
    m = jnp.einsum("bqk,bkc->bqc", a, v)
    return m.transpose(0, 2, 1).reshape(B, Cv, H, W)


if __name__ == "__main__":
    key = jax.random.PRNGKey(0)
    k1, k2, k3 = jax.random.split(key, 3)

    B, Ck, Cv, H, W = 2, 4, 4, 16, 16          # HW = 256
    query_query = jax.random.normal(k1, (B, Ck, H, W), dtype=jnp.float32)
    query_key = jax.random.normal(k2, (B, Ck, H, W), dtype=jnp.float32)
    query_value = jax.random.normal(k3, (B, Cv, H, W), dtype=jnp.float32)

    for norm in (False, True):
        # (128, 128): multi q-tile grid + 2-step inner kv loop.
        # (None, None): full-HW single block, single inner step.
        for (tq, tk) in ((128, 128), (None, None)):
            out = self_frame_attention(query_query, query_key, query_value,
                                       matmul_norm=norm, tq=tq, tk=tk)
            out = jax.block_until_ready(out)
            ref = _reference(query_query, query_key, query_value,
                             matmul_norm=norm)
            assert out.shape == (B, Cv, H, W)
            err = float(jnp.max(jnp.abs(out - ref)))
            # bf16 exp on v6e/v7x -> slightly loosened tolerance.
            assert jnp.allclose(out, ref, atol=3e-2, rtol=3e-2), (
                f"mismatch matmul_norm={norm} tq={tq} tk={tk}: "
                f"max abs err {err}")

    print("KERNEL_OK")
</pallas_src>

<mosaic_0001>
module attributes {stable_mosaic.version = 11 : i64} {
  func.func @_self_frame_attention_kernel(%arg0: i32, %arg1: i32, %arg2: memref<1x4x128xf32, #tpu.memory_space<vmem>>, %arg3: memref<1x4x256xf32, #tpu.memory_space<vmem>>, %arg4: memref<1x5x256xf32, #tpu.memory_space<vmem>>, %arg5: memref<1x4x128xf32, #tpu.memory_space<vmem>>) attributes {dimension_semantics = [#tpu.dimension_semantics<parallel>, #tpu.dimension_semantics<parallel>], iteration_bounds = array<i64: 2, 2>, scalar_prefetch = 0 : i64, scratch_operands = 0 : i64, tpu.core_type = #tpu.core_type<tc>, window_params = [{transform_indices = @transform_0, window_bounds = array<i64: 1, 4, 128>}, {transform_indices = @transform_1, window_bounds = array<i64: 1, 4, 256>}, {transform_indices = @transform_2, window_bounds = array<i64: 1, 5, 256>}, {transform_indices = @transform_3, window_bounds = array<i64: 1, 4, 128>}]} {
    %c0 = arith.constant 0 : index
    %c0_0 = arith.constant 0 : index
    %c0_1 = arith.constant 0 : index
    %0 = vector.load %arg2[%c0, %c0_0, %c0_1] : memref<1x4x128xf32, #tpu.memory_space<vmem>>, vector<1x4x128xf32>
    %1 = vector.shape_cast %0 : vector<1x4x128xf32> to vector<4x128xf32>
    %cst = arith.constant 0xFF800000 : f32
    %2 = vector.broadcast %cst : f32 to vector<1x128xf32>
    %cst_2 = arith.constant 0.000000e+00 : f32
    %3 = vector.broadcast %cst_2 : f32 to vector<5x128xf32>
    %c0_i32 = arith.constant 0 : i32
    %c128_i32 = arith.constant 128 : i32
    %4 = arith.muli %c0_i32, %c128_i32 : i32
    %5 = tpu.assume_multiple %4, 128 : i32
    %c0_3 = arith.constant 0 : index
    %c0_4 = arith.constant 0 : index
    %6 = arith.index_cast %5 : i32 to index
    %7 = vector.load %arg3[%c0_3, %c0_4, %6] : memref<1x4x256xf32, #tpu.memory_space<vmem>>, vector<1x4x128xf32>
    %8 = vector.shape_cast %7 : vector<1x4x128xf32> to vector<4x128xf32>
    %c0_5 = arith.constant 0 : index
    %c0_6 = arith.constant 0 : index
    %9 = arith.index_cast %5 : i32 to index
    %10 = vector.load %arg4[%c0_5, %c0_6, %9] : memref<1x5x256xf32, #tpu.memory_space<vmem>>, vector<1x5x128xf32>
    %11 = vector.shape_cast %10 : vector<1x5x128xf32> to vector<5x128xf32>
    %cst_7 = arith.constant dense<0.000000e+00> : vector<128x128xf32>
    %12 = tpu.matmul %8, %1, %cst_7 {dimension_numbers = #tpu.dot_dimension_numbers<[0], [0], [1], [1], [0, 1, 1, 1], [], []>} : vector<4x128xf32>, vector<4x128xf32>, vector<128x128xf32> -> vector<128x128xf32>
    %cst_8 = arith.constant dense<0xFF800000> : vector<128xf32>
    %13 = vector.multi_reduction <maximumf>, %12, %cst_8 [0] : vector<128x128xf32> to vector<128xf32>
    %14 = vector.shape_cast %13 : vector<128xf32> to vector<1x128xf32>
    %15 = arith.maximumf %2, %14 : vector<1x128xf32>
    %16 = arith.subf %2, %15 : vector<1x128xf32>
    %17 = math.exp %16 : vector<1x128xf32>
    %18 = vector.broadcast %15 : vector<1x128xf32> to vector<128x128xf32>
    %19 = arith.subf %12, %18 : vector<128x128xf32>
    %20 = math.exp %19 : vector<128x128xf32>
    %cst_9 = arith.constant dense<0.000000e+00> : vector<5x128xf32>
    %21 = tpu.matmul %11, %20, %cst_9 {dimension_numbers = #tpu.dot_dimension_numbers<[1], [0], [0], [1], [0, 0, 1, 1], [], []>} : vector<5x128xf32>, vector<128x128xf32>, vector<5x128xf32> -> vector<5x128xf32>
    %22 = vector.broadcast %17 : vector<1x128xf32> to vector<5x128xf32>
    %23 = arith.mulf %22, %3 : vector<5x128xf32>
    %24 = arith.addf %23, %21 : vector<5x128xf32>
    %c1_i32 = arith.constant 1 : i32
    %c128_i32_10 = arith.constant 128 : i32
    %25 = arith.muli %c1_i32, %c128_i32_10 : i32
    %26 = tpu.assume_multiple %25, 128 : i32
    %c0_11 = arith.constant 0 : index
    %c0_12 = arith.constant 0 : index
    %27 = arith.index_cast %26 : i32 to index
    %28 = vector.load %arg3[%c0_11, %c0_12, %27] : memref<1x4x256xf32, #tpu.memory_space<vmem>>, vector<1x4x128xf32>
    %29 = vector.shape_cast %28 : vector<1x4x128xf32> to vector<4x128xf32>
    %c0_13 = arith.constant 0 : index
    %c0_14 = arith.constant 0 : index
    %30 = arith.index_cast %26 : i32 to index
    %31 = vector.load %arg4[%c0_13, %c0_14, %30] : memref<1x5x256xf32, #tpu.memory_space<vmem>>, vector<1x5x128xf32>
    %32 = vector.shape_cast %31 : vector<1x5x128xf32> to vector<5x128xf32>
    %cst_15 = arith.constant dense<0.000000e+00> : vector<128x128xf32>
    %33 = tpu.matmul %29, %1, %cst_15 {dimension_numbers = #tpu.dot_dimension_numbers<[0], [0], [1], [1], [0, 1, 1, 1], [], []>} : vector<4x128xf32>, vector<4x128xf32>, vector<128x128xf32> -> vector<128x128xf32>
    %cst_16 = arith.constant dense<0xFF800000> : vector<128xf32>
    %34 = vector.multi_reduction <maximumf>, %33, %cst_16 [0] : vector<128x128xf32> to vector<128xf32>
    %35 = vector.shape_cast %34 : vector<128xf32> to vector<1x128xf32>
    %36 = arith.maximumf %15, %35 : vector<1x128xf32>
    %37 = arith.subf %15, %36 : vector<1x128xf32>
    %38 = math.exp %37 : vector<1x128xf32>
    %39 = vector.broadcast %36 : vector<1x128xf32> to vector<128x128xf32>
    %40 = arith.subf %33, %39 : vector<128x128xf32>
    %41 = math.exp %40 : vector<128x128xf32>
    %cst_17 = arith.constant dense<0.000000e+00> : vector<5x128xf32>
    %42 = tpu.matmul %32, %41, %cst_17 {dimension_numbers = #tpu.dot_dimension_numbers<[1], [0], [0], [1], [0, 0, 1, 1], [], []>} : vector<5x128xf32>, vector<128x128xf32>, vector<5x128xf32> -> vector<5x128xf32>
    %43 = vector.broadcast %38 : vector<1x128xf32> to vector<5x128xf32>
    %44 = arith.mulf %43, %24 : vector<5x128xf32>
    %45 = arith.addf %44, %42 : vector<5x128xf32>
    %c2_i32 = arith.constant 2 : i32
    %46 = vector.extract_strided_slice %45 {offsets = [4, 0], sizes = [1, 128], strides = [1, 1]} : vector<5x128xf32> to vector<1x128xf32>
    %47 = tpu.reciprocal %46 : vector<1x128xf32> -> vector<1x128xf32>
    %48 = vector.extract_strided_slice %45 {offsets = [0, 0], sizes = [4, 128], strides = [1, 1]} : vector<5x128xf32> to vector<4x128xf32>
    %49 = vector.broadcast %47 : vector<1x128xf32> to vector<4x128xf32>
    %50 = arith.mulf %48, %49 : vector<4x128xf32>
    %c0_18 = arith.constant 0 : index
    %c0_19 = arith.constant 0 : index
    %c0_20 = arith.constant 0 : index
    %51 = vector.load %arg5[%c0_18, %c0_19, %c0_20] : memref<1x4x128xf32, #tpu.memory_space<vmem>>, vector<1x4x128xf32>
    %52 = vector.shape_cast %51 : vector<1x4x128xf32> to vector<4x128xf32>
    %53 = vector.shape_cast %50 : vector<4x128xf32> to vector<1x4x128xf32>
    tpu.vector_store %arg5[%c0_18, %c0_19, %c0_20], %53 {strides = array<i32>} : memref<1x4x128xf32, #tpu.memory_space<vmem>>, vector<1x4x128xf32>,
    return
  }
  func.func @transform_0(%arg0: i32, %arg1: i32) -> (i32, i32, i32) {
    %c0_i32 = arith.constant 0 : i32
    %c0_i32_0 = arith.constant 0 : i32
    return %arg0, %c0_i32, %arg1 : i32, i32, i32
  }
  func.func @transform_1(%arg0: i32, %arg1: i32) -> (i32, i32, i32) {
    %c0_i32 = arith.constant 0 : i32
    %c0_i32_0 = arith.constant 0 : i32
    %c0_i32_1 = arith.constant 0 : i32
    return %arg0, %c0_i32, %c0_i32_0 : i32, i32, i32
  }
  func.func @transform_2(%arg0: i32, %arg1: i32) -> (i32, i32, i32) {
    %c0_i32 = arith.constant 0 : i32
    %c0_i32_0 = arith.constant 0 : i32
    %c0_i32_1 = arith.constant 0 : i32
    return %arg0, %c0_i32, %c0_i32_0 : i32, i32, i32
  }
  func.func @transform_3(%arg0: i32, %arg1: i32) -> (i32, i32, i32) {
    %c0_i32 = arith.constant 0 : i32
    %c0_i32_0 = arith.constant 0 : i32
    return %arg0, %c0_i32, %arg1 : i32, i32, i32
  }
}

</mosaic_0001>

<bundles_post_ra>
// kernel: tpu_custom_call.1
= control target key start
LH: loop header
LB: loop body
LE: loop exit
PB: predicated region body
PF: predicated region fallthrough
CT: control target
= control target key end

     0   :  { %8 = vsyncpa [#allocation3], 0  ;;  %s1497_s0 = inlined_call_operand.vmem [shape: f32[2,4,256], index: 0, kind: input, shape index: {}]   ;;  %s1498_s1 = inlined_call_operand.vmem [shape: f32[2,4,256], index: 1, kind: input, shape index: {}]   ;;  %s1499_s2 = inlined_call_operand.vmem [shape: f32[2,5,256], index: 2, kind: input, shape index: {}]   ;;  %s1500_s3 = inlined_call_operand.hbm [shape: f32[2,4,256], index: 3, kind: output, shape index: {}]  }
   0x1   :  { %10 = vsyncpa [#allocation3 + $0x1], 0  ;;  %s1177_s12 = smov 0   ;;  %s1179_s13 = smov 0  }
   0x2   :  { %s1181_s14 = smov 0   ;;  %s1183_s15 = smov 0  }
   0x3   :  { %s1185_s16 = smov 0   ;;  %s1187_s17 = smov 0  }
   0x4   :  { %s1189_s18 = smov 0   ;;  %s1191_s19 = smov 0  }
   0x5 LB: > { %s862_s20 = sadd.s32 4294967295, %s1155_s19   ;;  %s863_s21 = sadd.s32 4294967294, %s1155_s19   ;;  %s1155_s19 = sphi %s1191_s19, %s16_s19   ;;  %s1151_s18 = sphi %s1189_s18, %s1509_s18   ;;  %s1147_s17 = sphi %s1187_s17, %s1508_s17   ;;  %s1143_s16 = sphi %s1185_s16, %s1507_s16   ;;  %s1139_s15 = sphi %s1183_s15, %s1506_s15   ;;  %s1135_s14 = sphi %s1181_s14, %s1505_s14   ;;  %s1131_s13 = sphi %s1179_s13, %s1504_s13   ;;  %s1127_s12 = sphi %s1177_s12, %s1503_s12  }
   0x6   : > { %s25_s22 = sadd.s32 1, %s1147_s17  ;;  %s28_s23 = sadd.s32 1, %s1151_s18 }
   0x7   : > { %p26_p0 = scmp.ge.s32.totalorder %s25_s22, 2  ;;  %p127_p1 = scmp.ne.s32.totalorder %s1135_s14, %s1131_s13 }
   0x8   : > { %p128_p2 = scmp.eq.s32.totalorder %s862_s20, 3  ;;  %p133_p5 = scmp.ne.s32.totalorder %s1131_s13, %s1127_s12 }
   0x9   : > { %s1511_s22 = smov (%p26_p0, %s25_s22), 0  ;;  %s1513_s23 = smov (!%p26_p0, %s28_s23), %s1151_s18 }
   0xa   : > { %s113_s24 = ssub.s32 %s1147_s17, %s1511_s22  ;;  %p1228_p3 = por %p128_p2, %p127_p1 }
   0xb   : > { %p30_p4 = scmp.ge.s32.totalorder %s1513_s23, 2  ;;  %p134_p6 = scmp.eq.s32.totalorder %s863_s21, 3 }
   0xc   : > { %p866_p7 = scmp.ge.s32.totalorder %s1155_s19, 1  ;;  %p179_p9 = scmp.lt.s32.totalorder %s1155_s19, 5 }
   0xd   : > { %s1515_s23 = smov (%p30_p4, %s1513_s23), 0  ;;  %p1237_p8 = por %p134_p6, %p133_p5 }
   0xe   : > { %s112_s27 = ssub.s32 %s1151_s18, %s1515_s23  ;;  %s117_s28 = sadd.s32 1, %s1135_s14 }
   0xf   : > { %s114_s29 = sor.u32 %s113_s24, %s112_s27  ;;  %p180_p10 = pnand %p866_p7, %p179_p9 }
  0x10   : > { %p115_p11 = scmp.eq.s32.totalorder %s114_s29, 0  ;;  %p216_p12 = scmp.lt.s32.totalorder (!%p180_p10), %s1143_s16, 1 }
  0x11   : > { %183 = sbr.rel (%p180_p10) target bundleno = 786 (0x312), region = 32  ;;  %p218_p13 = scmp.lt.s32.totalorder (!%p180_p10), %s1139_s15, 1 }
  0x12   : > { %s1246_s30 = scalar_select %p115_p11, %s1135_s14, %s117_s28  }
  0x13   : > { %s213_s7 = sand.u32 (!%p180_p10), 1, %s1131_s13  }
  0x16   : > { %s1250_s4 = scalar_select %p216_p12, %s1143_s16, 1  ;;  %vm318_vm0 = vcmask 1043456   ;;  %vm269_vm1 = vcmask 31744  }
  0x17   : > { %s219_s9 = scalar_select %p218_p13, %s1139_s15, 1 }
  0x18   : > { %s915_s5 = sshll.u32 %s1250_s4, 3  ;;  %s868_s10 = sshll.u32 %s1250_s4, 1 }
  0x19   : > { %s228_s8 = scalar_lea.vmem %s1498_s1, %s915_s5  ;;  %s221_s11 = sadd.s32 %s868_s10, %s219_s9 }
  0x1a   : > { %v891_v0 = vld [vmem:[%s228_s8 + $0x4] sm:$0xf]  ;;  %v235_v1 = vld [vmem:[%s228_s8] sm:$0xf]  ;;  %s869_s20 = sshll.u32 %s221_s11, 2  ;;  %s916_s28 = sshll.u32 %s1250_s4, 4 }
  0x1b   : > { %485 = vxpose.xlu0.b32.start.end [1/1] (short) %v891_v0, 128  ;;  %s223_s27 = scalar_lea.vmem %s1497_s0, %s869_s20  ;;  %s233_s6 = scalar_lea.vmem %s1499_s2, %s916_s28 }
  0x1c   : > { %v234_v2 = vld [vmem:[%s223_s27] sm:$0xf]  ;;  %s911_s4 = sshll.u32 %s1143_s16, 1  ;;  %s867_s9 = sshll.u32 %s213_s7, 2 }
  0x1d   : > { %893 = vmatpush.msk.msra.mxu2 %vm318_vm0, %v234_v2  ;;  %918 = vmatpush.msk.msra.mxu3 %vm318_vm0, %v234_v2  ;;  %s753_s8 = sadd.s32 %s1139_s15, %s911_s4  ;;  %s215_s15 = scalar_lea.vmem [#allocation2], %s867_s9 }
  0x1e   : > { %874 = vmatpush.msk.msra.mxu0 %vm318_vm0, %v234_v2  ;;  %917 = vmatpush.msk.msra.mxu1 %vm318_vm0, %v234_v2  ;;  %s912_s10 = sshll.u32 %s753_s8, 2  ;;  %s757_s16 = sshll.u32 %s215_s15, 4  ;;  %s758_s16 = int_to_ptr.vmem [resolvable:$true] %s757_s16 }
  0x1f   : > { %s755_s21 = scalar_lea.hbm %s1500_s3, %s912_s10  ;;  %s743_s27 = scalar_lea.sflag [#allocation3], %s213_s7 }
  0x20   : > { %s759_s24 = sshll.u32 %s755_s21, 4  ;;  %s1081_s4 = scalar_lea.hbm %s1500_s3, 16  ;;  %s760_s24 = int_to_ptr.hbm [resolvable:$true] %s759_s24 }
  0x21   : > { %s1075_s28 = sshra.s32 %s760_s24, 4  ;;  %s1076_s28 = int_to_ptr.hbm [resolvable:$true] %s1075_s28 }
  0x22   : > { %s1077_s29 = scalar_lea.hbm %s1076_s28, 4  ;;  %p1082_p4 = scmp.lt.s32.totalorder %s1076_s28, %s1500_s3 }
  0x23   : > { %p1078_p0 = scmp.ne.s32.totalorder %s1076_s28, %s1077_s29  ;;  %p1083_p5 = scmp.lt.s32.totalorder %s1081_s4, %s1077_s29 }
  0x25   : > { %p1079_p1 = pnand %p1078_p0, %p1228_p3  ;;  %p1084_p6 = por %p1083_p5, %p1082_p4 }
  0x27   : > { %p1080_p2 = pneg %p1079_p1 }
  0x29   : > { %p1085_p7 = pnand %p1084_p6, %p1080_p2 }
  0x9b   : > { %237 = vxpose.xlu0.b32.start.end [1/1] (short) %v235_v1, 128 }
  0xbf   : > { %v501_v3 = vpop.trf.xlu0 }
  0xc0   : > { %894 = vmatmul.msk.f32.vlgmr.msra.gmra.mxu2 %vm269_vm1, %v501_v3 }
  0xc7   : > { %v502_v4 = vpop.trf.xlu0 }
  0xc8   : > { %895 = vmatmul.msk.f32.gmra.mxu2 %vm269_vm1, %v502_v4 }
  0xcf   : > { %v503_v5 = vpop.trf.xlu0 }
  0xd0   : > { %896 = vmatmul.msk.f32.gmra.mxu2 %vm269_vm1, %v503_v5 }
  0xd7   : > { %v504_v6 = vpop.trf.xlu0 }
  0xd8   : > { %897 = vmatmul.msk.f32.gmra.mxu2 %vm269_vm1, %v504_v6 }
  0xdf   : > { %v505_v7 = vpop.trf.xlu0 }
  0xe0   : > { %898 = vmatmul.msk.f32.gmra.mxu2 %vm269_vm1, %v505_v7 }
  0xe7   : > { %v506_v8 = vpop.trf.xlu0 }
  0xe8   : > { %899 = vmatmul.msk.f32.gmra.mxu2 %vm269_vm1, %v506_v8 }
  0xef   : > { %v507_v9 = vpop.trf.xlu0 }
  0xf0   : > { %900 = vmatmul.msk.f32.gmra.mxu2 %vm269_vm1, %v507_v9 }
  0xf7   : > { %v508_v10 = vpop.trf.xlu0 }
  0xf8   : > { %901 = vmatmul.msk.f32.gmra.mxu2 %vm269_vm1, %v508_v10 }
  0xff   : > { %v509_v11 = vpop.trf.xlu0 }
 0x100   : > { %902 = vmatmul.msk.f32.gmra.mxu2 %vm269_vm1, %v509_v11 }
 0x107   : > { %v510_v12 = vpop.trf.xlu0 }
 0x108   : > { %903 = vmatmul.msk.f32.vlgmr.msra.gmra.mxu3 %vm269_vm1, %v510_v12 }
 0x10f   : > { %v511_v13 = vpop.trf.xlu0 }
 0x110   : > { %904 = vmatmul.msk.f32.gmra.mxu3 %vm269_vm1, %v511_v13 }
 0x117   : > { %v512_v14 = vpop.trf.xlu0 }
 0x118   : > { %905 = vmatmul.msk.f32.gmra.mxu3 %vm269_vm1, %v512_v14 }
 0x11f   : > { %v513_v15 = vpop.trf.xlu0 }
 0x120   : > { %906 = vmatmul.msk.f32.gmra.mxu3 %vm269_vm1, %v513_v15 }
 0x127   : > { %v514_v16 = vpop.trf.xlu0 }
 0x128   : > { %907 = vmatmul.msk.f32.gmra.mxu3 %vm269_vm1, %v514_v16 }
 0x12f   : > { %v515_v17 = vpop.trf.xlu0 }
 0x130   : > { %908 = vmatmul.msk.f32.gmra.mxu3 %vm269_vm1, %v515_v17 }
 0x137   : > { %v516_v18 = vpop.trf.xlu0 }
 0x138   : > { %909 = vmatmul.msk.f32.gmra.mxu3 %vm269_vm1, %v516_v18 }
 0x13f   : > { %v253_v19 = vpop.trf.xlu0 }
 0x140   : > { %875 = vmatmul.msk.f32.vlgmr.msra.gmra.mxu0 %vm269_vm1, %v253_v19 }
 0x143   : > { %v1294_v35 = vpop.f32.mrf.mxu2 }
 0x147   : > { %v254_v20 = vpop.trf.xlu0 }
 0x148   : > { %876 = vmatmul.msk.f32.gmra.mxu0 %vm269_vm1, %v254_v20 }
 0x14b   : > { %v1298_v37 = vpop.f32.mrf.mxu2 }
 0x14f   : > { %v255_v21 = vpop.trf.xlu0 }
 0x150   : > { %877 = vmatmul.msk.f32.gmra.mxu0 %vm269_vm1, %v255_v21 }
 0x153   : > { %v1304_v40 = vpop.f32.mrf.mxu2 }
 0x157   : > { %v256_v22 = vpop.trf.xlu0 }
 0x158   : > { %878 = vmatmul.msk.f32.gmra.mxu0 %vm269_vm1, %v256_v22 }
 0x15b   : > { %v1310_v43 = vpop.f32.mrf.mxu2 }
 0x15f   : > { %v257_v23 = vpop.trf.xlu0 }
 0x160   : > { %879 = vmatmul.msk.f32.gmra.mxu0 %vm269_vm1, %v257_v23 }
 0x163   : > { %v1316_v46 = vpop.f32.mrf.mxu2 }
 0x164   : > { %v630_v2 = vmax.f32 %v1294_v35, %v1316_v46 }
 0x167   : > { %v258_v24 = vpop.trf.xlu0 }
 0x168   : > { %880 = vmatmul.msk.f32.gmra.mxu0 %vm269_vm1, %v258_v24 }
 0x16b   : > { %v1322_v49 = vpop.f32.mrf.mxu2 }
 0x16c   : > { %v631_v62 = vmax.f32 %v1298_v37, %v1322_v49 }
 0x16f   : > { %v259_v25 = vpop.trf.xlu0 }
 0x170   : > { %881 = vmatmul.msk.f32.gmra.mxu0 %vm269_vm1, %v259_v25 }
 0x173   : > { %v1330_v53 = vpop.f32.mrf.mxu2 }
 0x174   : > { %v632_v63 = vmax.f32 %v1304_v40, %v1330_v53 }
 0x177   : > { %v260_v26 = vpop.trf.xlu0 }
 0x178   : > { %882 = vmatmul.msk.f32.gmra.mxu0 %vm269_vm1, %v260_v26 }
 0x17b   : > { %v1338_v57 = vpop.f32.mrf.mxu2 }
 0x17c   : > { %v633_v60 = vmax.f32 %v1310_v43, %v1338_v57 }
 0x17f   : > { %v261_v27 = vpop.trf.xlu0 }
 0x180   : > { %883 = vmatmul.msk.f32.gmra.mxu0 %vm269_vm1, %v261_v27 }
 0x183   : > { %v1351_v1 = vpop.f32.mrf.mxu2 }
 0x184   : > { %v634_v8 = vmax.f32 %v630_v2, %v1351_v1 }
 0x187   : > { %v262_v28 = vpop.trf.xlu0 }
 0x188   : > { %884 = vmatmul.msk.f32.gmra.mxu0 %vm269_vm1, %v262_v28 }
 0x18b   : > { %v1302_v39 = vpop.f32.mrf.mxu3 }
 0x18c   : > { %v635_v3 = vmax.f32 %v631_v62, %v1302_v39 }
 0x18f   : > { %v263_v29 = vpop.trf.xlu0 }
 0x190   : > { %885 = vmatmul.msk.f32.vlgmr.msra.gmra.mxu1 %vm269_vm1, %v263_v29 }
 0x193   : > { %v1308_v42 = vpop.f32.mrf.mxu3 }
 0x194   : > { %v636_v4 = vmax.f32 %v632_v63, %v1308_v42 }
 0x197   : > { %v264_v30 = vpop.trf.xlu0 }
 0x198   : > { %886 = vmatmul.msk.f32.gmra.mxu1 %vm269_vm1, %v264_v30 }
 0x19b   : > { %v1314_v45 = vpop.f32.mrf.mxu3 }
 0x19c   : > { %v637_v0 = vmax.f32 %v633_v60, %v1314_v45 }
 0x19f   : > { %v265_v31 = vpop.trf.xlu0 }
 0x1a0   : > { %887 = vmatmul.msk.f32.gmra.mxu1 %vm269_vm1, %v265_v31 }
 0x1a3   : > { %v1320_v48 = vpop.f32.mrf.mxu3 }
 0x1a4   : > { %v638_v11 = vmax.f32 %v634_v8, %v1320_v48 }
 0x1a7   : > { %v266_v32 = vpop.trf.xlu0 }
 0x1a8   : > { %888 = vmatmul.msk.f32.gmra.mxu1 %vm269_vm1, %v266_v32 }
 0x1ab   : > { %v1328_v52 = vpop.f32.mrf.mxu3 }
 0x1ac   : > { %v639_v9 = vmax.f32 %v635_v3, %v1328_v52 }
 0x1ae   : > { %v642_v13 = vmax.f32 %v638_v11, %v639_v9 }
 0x1af   : > { %v267_v33 = vpop.trf.xlu0 }
 0x1b0   : > { %889 = vmatmul.msk.f32.gmra.mxu1 %vm269_vm1, %v267_v33 }
 0x1b3   : > { %v1336_v56 = vpop.f32.mrf.mxu3 }
 0x1b4   : > { %v640_v10 = vmax.f32 %v636_v4, %v1336_v56 }
 0x1b7   : > { %v268_v34 = vpop.trf.xlu0 }
 0x1b8   : > { %890 = vmatmul.msk.f32.gmra.mxu1 %vm269_vm1, %v268_v34 }
 0x1bb   : > { %v627_v61 = vpop.f32.mrf.mxu3 }
 0x1bc   : > { %v641_v5 = vmax.f32 %v637_v0, %v627_v61 }
 0x1bd   : > { %v1296_v36 = vpop.f32.mrf.mxu0 }
 0x1be   : > { %v643_v12 = vmax.f32 %v640_v10, %v641_v5 }
 0x1c0   : > { %v644_v14 = vmax.f32 %v642_v13, %v643_v12 }
 0x1c2   : > { %v645_v18 = vrot.slane %v644_v14, 4 }
 0x1c4   : > { %v646_v28 = vmax.f32 %v644_v14, %v645_v18 }
 0x1c5   : > { %v1300_v38 = vpop.f32.mrf.mxu0 }
 0x1c6   : > { %v647_v34 = vrot.slane %v646_v28, 2 }
 0x1c8   : > { %v648_v63 = vmax.f32 %v646_v28, %v647_v34 }
 0x1ca   : > { %v649_v3 = vrot.slane %v648_v63, 1 }
 0x1cc   : > { %v650_v8 = vmax.f32 %v648_v63, %v649_v3 }
 0x1cd   : > { %v1306_v41 = vpop.f32.mrf.mxu0 }
 0x1d5   : > { %v1312_v44 = vpop.f32.mrf.mxu0 }
 0x1dd   : > { %v1318_v47 = vpop.f32.mrf.mxu0 }
 0x1de   : > { %v387_v19 = vmax.f32 %v1296_v36, %v1318_v47 }
 0x1e5   : > { %v1324_v50 = vpop.f32.mrf.mxu0 }
 0x1e6   : > { %v388_v17 = vmax.f32 %v1300_v38, %v1324_v50 }
 0x1ed   : > { %v1332_v54 = vpop.f32.mrf.mxu0 }
 0x1ee   : > { %v389_v20 = vmax.f32 %v1306_v41, %v1332_v54 }
 0x1f5   : > { %v1340_v58 = vpop.f32.mrf.mxu0 }
 0x1f6   : > { %v390_v21 = vmax.f32 %v1312_v44, %v1340_v58 }
 0x1fd   : > { %v1357_v6 = vpop.f32.mrf.mxu0 }
 0x1fe   : > { %v391_v23 = vmax.f32 %v387_v19, %v1357_v6 }
 0x205   : > { %v1363_v16 = vpop.f32.mrf.mxu0 }
 0x206   : > { %v392_v22 = vmax.f32 %v388_v17, %v1363_v16 }
 0x20d   : > { %v1326_v51 = vpop.f32.mrf.mxu1 }
 0x20e   : > { %v393_v24 = vmax.f32 %v389_v20, %v1326_v51 }
 0x215   : > { %v1334_v55 = vpop.f32.mrf.mxu1 }
 0x216   : > { %v394_v25 = vmax.f32 %v390_v21, %v1334_v55 }
 0x21d   : > { %v1342_v59 = vpop.f32.mrf.mxu1 }
 0x21e   : > { %v395_v29 = vmax.f32 %v391_v23, %v1342_v59 }
 0x225   : > { %v378_v7 = vpop.f32.mrf.mxu1 }
 0x226   : > { %v396_v26 = vmax.f32 %v392_v22, %v378_v7 }
 0x228   : > { %v399_v32 = vmax.f32 %v395_v29, %v396_v26 }
 0x22d   : > { %v381_v15 = vpop.f32.mrf.mxu1 }
 0x22e   : > { %v397_v30 = vmax.f32 %v393_v24, %v381_v15 }
 0x235   : > { %v384_v27 = vpop.f32.mrf.mxu1 }
 0x236   : > { %v398_v31 = vmax.f32 %v394_v25, %v384_v27 }
 0x238   : > { %v400_v33 = vmax.f32 %v397_v30, %v398_v31 }
 0x23a   : > { %v401_v60 = vmax.f32 %v399_v32, %v400_v33 }
 0x23c   : > { %v402_v62 = vrot.slane %v401_v60, 4 }
 0x23e   : > { %v403_v0 = vmax.f32 %v401_v60, %v402_v62 }
 0x240   : > { %v404_v2 = vrot.slane %v403_v0, 2 }
 0x242   : > { %v405_v4 = vmax.f32 %v403_v0, %v404_v2 }
 0x244   : > { %v406_v5 = vrot.slane %v405_v4, 1 }
 0x246   : > { %v1378_v9 = vmax.f32 %v405_v4, %v406_v5 }
 0x248   : > { %v426_v10 = vsub.f32 %v384_v27, %v1378_v9  ;;  %v425_v11 = vsub.f32 %v381_v15, %v1378_v9  ;;  %v1383_v12 = vmax.f32 %v1378_v9, %v650_v8  ;;  %v424_v13 = vsub.f32 %v378_v7, %v1378_v9 }
 0x249   : > { %v423_v14 = vsub.f32 %v1342_v59, %v1378_v9  ;;  %v422_v15 = vsub.f32 %v1334_v55, %v1378_v9  ;;  %v420_v55 = vsub.f32 %v1363_v16, %v1378_v9  ;;  %v418_v31 = vsub.f32 %v1340_v58, %v1378_v9 }
 0x24a   : > { %v457_v17 = vmul.f32 1.442695, %v426_v10  ;;  %v455_v18 = vmul.f32 1.442695, %v425_v11  ;;  %v670_v19 = vsub.f32 %v627_v61, %v1383_v12  ;;  %v453_v20 = vmul.f32 1.442695, %v424_v13 }
 0x24b   : > { %v669_v21 = vsub.f32 %v1336_v56, %v1383_v12  ;;  %v668_v22 = vsub.f32 %v1328_v52, %v1383_v12  ;;  %v667_v7 = vsub.f32 %v1320_v48, %v1383_v12  ;;  %v451_v24 = vmul.f32 1.442695, %v423_v14 }
 0x24c   : > { %991 = vpow2.f32 %v457_v17  ;;  %v701_v23 = vmul.f32 1.442695, %v670_v19  ;;  %v421_v61 = vsub.f32 %v1326_v51, %v1378_v9  ;;  %v666_v56 = vsub.f32 %v1314_v45, %v1383_v12 }
 0x24d   : > { %993 = vpow2.f32 %v455_v18  ;;  %v699_v59 = vmul.f32 1.442695, %v669_v21  ;;  %v697_v25 = vmul.f32 1.442695, %v668_v22  ;;  %v449_v52 = vmul.f32 1.442695, %v422_v15 }
 0x24e   : > { %995 = vpow2.f32 %v701_v23  ;;  %v695_v26 = vmul.f32 1.442695, %v667_v7  ;;  %v665_v48 = vsub.f32 %v1308_v42, %v1383_v12  ;;  %v447_v27 = vmul.f32 1.442695, %v421_v61 }
 0x24f   : > { %997 = vpow2.f32 %v453_v20  ;;  %v419_v51 = vsub.f32 %v1357_v6, %v1378_v9  ;;  %v693_v29 = vmul.f32 1.442695, %v666_v56  ;;  %v664_v45 = vsub.f32 %v1302_v39, %v1383_v12 }
 0x250   : > { %999 = vpow2.f32 %v699_v59  ;;  %v445_v16 = vmul.f32 1.442695, %v420_v55  ;;  %v691_v42 = vmul.f32 1.442695, %v665_v48  ;;  %v663_v33 = vsub.f32 %v1351_v1, %v1383_v12 }
 0x251   : > { %1001 = vpow2.f32 %v451_v24  ;;  %v443_v34 = vmul.f32 1.442695, %v419_v51  ;;  %v417_v39 = vsub.f32 %v1332_v54, %v1378_v9  ;;  %v689_v62 = vmul.f32 1.442695, %v664_v45 }
 0x252   : > { %v992_v28 = vpop.eup %991  ;;  %1003 = vpow2.f32 %v697_v25  ;;  %v662_v58 = vsub.f32 %v1338_v57, %v1383_v12  ;;  %v441_v0 = vmul.f32 1.442695, %v418_v31  ;;  %v416_v1 = vsub.f32 %v1324_v50, %v1378_v9 }
 0x253   : > { %v994_v30 = vpop.eup %993  ;;  %459 = vmatpush.msrb.mxu1 %v992_v28  ;;  %1005 = vpow2.f32 %v449_v52  ;;  %v687_v3 = vmul.f32 1.442695, %v663_v33  ;;  %v661_v54 = vsub.f32 %v1330_v53, %v1383_v12  ;;  %v439_v5 = vmul.f32 1.442695, %v417_v39  ;;  %v892_v39 = vld [vmem:[%s233_s6 + $0x8] sm:$0x1f] }
 0x254   : > { %v996_v32 = vpop.eup %995  ;;  %1007 = vpow2.f32 %v695_v26  ;;  %v415_v57 = vsub.f32 %v1318_v47, %v1378_v9  ;;  %v685_v10 = vmul.f32 1.442695, %v662_v58  ;;  %v660_v50 = vsub.f32 %v1322_v49, %v1383_v12 }
 0x255   : > { %v998_v6 = vpop.eup %997  ;;  %460 = vmatpush.msrb.mxu1 %v994_v30  ;;  %703 = vmatpush.msrb.mxu3 %v996_v32  ;;  %1009 = vpow2.f32 %v447_v27  ;;  %v437_v13 = vmul.f32 1.442695, %v416_v1  ;;  %v414_v53 = vsub.f32 %v1312_v44, %v1378_v9  ;;  %v683_v17 = vmul.f32 1.442695, %v661_v54 }
 0x256   : > { %v1000_v60 = vpop.eup %999  ;;  %1011 = vpow2.f32 %v693_v29  ;;  %v659_v47 = vsub.f32 %v1316_v46, %v1383_v12  ;;  %v652_v18 = vsub.f32 %v1378_v9, %v1383_v12  ;;  %v435_v49 = vmul.f32 1.442695, %v415_v57 }
 0x257   : > { %v1002_v63 = vpop.eup %1001  ;;  %461 = vmatpush.msrb.mxu1 %v998_v6  ;;  %704 = vmatpush.msrb.mxu3 %v1000_v60  ;;  %1013 = vpow2.f32 %v445_v16  ;;  %v413_v20 = vsub.f32 %v1306_v41, %v1378_v9  ;;  %v681_v44 = vmul.f32 1.442695, %v660_v50  ;;  %v658_v22 = vsub.f32 %v1310_v43, %v1383_v12  ;;  %v236_v6 = vld [vmem:[%s233_s6] sm:$0x1f] }
 0x258   : > { %v1004_v2 = vpop.eup %1003  ;;  %1015 = vpow2.f32 %v691_v42  ;;  %v433_v46 = vmul.f32 1.442695, %v414_v53  ;;  %v412_v23 = vsub.f32 %v1300_v38, %v1378_v9  ;;  %v679_v59 = vmul.f32 1.442695, %v659_v47 }
 0x259   : > { %v1006_v4 = vpop.eup %1005  ;;  %462 = vmatpush.msrb.mxu1 %v1002_v63  ;;  %705 = vmatpush.msrb.mxu3 %v1004_v2  ;;  %1017 = vpow2.f32 %v443_v34  ;;  %v657_v41 = vsub.f32 %v1304_v40, %v1383_v12  ;;  %v431_v61 = vmul.f32 1.442695, %v413_v20  ;;  %v411_v43 = vsub.f32 %v1296_v36, %v1378_v9 }
 0x25a   : > { %v1008_v8 = vpop.eup %1007  ;;  %1019 = vpow2.f32 %v689_v62  ;;  %v677_v56 = vmul.f32 1.442695, %v658_v22  ;;  %v656_v38 = vsub.f32 %v1298_v37, %v1383_v12  ;;  %v429_v55 = vmul.f32 1.442695, %v412_v23 }
 0x25b   : > { %v1010_v11 = vpop.eup %1009  ;;  %463 = vmatpush.msrb.mxu1 %v1006_v4  ;;  %706 = vmatpush.msrb.mxu3 %v1008_v8  ;;  %1021 = vpow2.f32 %v441_v0  ;;  %v675_v26 = vmul.f32 1.442695, %v657_v41  ;;  %v655_v48 = vsub.f32 %v1294_v35, %v1383_v12  ;;  %v427_v36 = vmul.f32 1.442695, %v411_v43 }
 0x25c   : > { %v1012_v14 = vpop.eup %1011  ;;  %1023 = vpow2.f32 %v687_v3  ;;  %v673_v37 = vmul.f32 1.442695, %v656_v38  ;;  %v408_v62 = vsub.f32 -inf, %v1378_v9  ;;  %v653_v63 = vmul.f32 1.442695, %v652_v18 }
 0x25d   : > { %v1014_v19 = vpop.eup %1013  ;;  %464 = vmatpush.msrb.mxu1 %v1010_v11  ;;  %707 = vmatpush.msrb.mxu3 %v1012_v14  ;;  %1025 = vpow2.f32 %v439_v5  ;;  %v671_v45 = vmul.f32 1.442695, %v655_v48 }
 0x25e   : > { %v1016_v21 = vpop.eup %1015  ;;  %1027 = vpow2.f32 %v685_v10  ;;  %v409_v58 = vmul.f32 1.442695, %v408_v62 }
 0x25f   : > { %v1018_v15 = vpop.eup %1017  ;;  %465 = vmatpush.msrb.mxu1 %v1014_v19  ;;  %708 = vmatpush.msrb.mxu3 %v1016_v21  ;;  %1029 = vpow2.f32 %v437_v13 }
 0x260   : > { %v1020_v7 = vpop.eup %1019  ;;  %1031 = vpow2.f32 %v683_v17 }
 0x261   : > { %v1022_v24 = vpop.eup %1021  ;;  %466 = vmatpush.msrb.mxu1 %v1018_v15  ;;  %709 = vmatpush.msrb.mxu3 %v1020_v7  ;;  %1033 = vpow2.f32 %v435_v49 }
 0x262   : > { %v1024_v25 = vpop.eup %1023  ;;  %1035 = vpow2.f32 %v681_v44 }
 0x263   : > { %v1026_v52 = vpop.eup %1025  ;;  %467 = vmatpush.msrb.mxu1 %v1022_v24  ;;  %710 = vmatpush.msrb.mxu3 %v1024_v25  ;;  %1037 = vpow2.f32 %v433_v46 }
 0x264   : > { %v1028_v40 = vpop.eup %1027  ;;  %1039 = vpow2.f32 %v679_v59 }
 0x265   : > { %v1030_v27 = vpop.eup %1029  ;;  %468 = vmatpush.msrb.mxu1 %v1026_v52  ;;  %711 = vmatpush.msrb.mxu3 %v1028_v40  ;;  %1041 = vpow2.f32 %v431_v61 }
 0x266   : > { %v1032_v51 = vpop.eup %1031  ;;  %1043 = vpow2.f32 %v677_v56 }
 0x267   : > { %v1034_v28 = vpop.eup %1033  ;;  %469 = vmatpush.msrb.mxu1 %v1030_v27  ;;  %712 = vmatpush.msrb.mxu3 %v1032_v51  ;;  %1045 = vpow2.f32 %v429_v55 }
 0x268   : > { %v1036_v29 = vpop.eup %1035  ;;  %1047 = vpow2.f32 %v675_v26 }
 0x269   : > { %v1038_v30 = vpop.eup %1037  ;;  %470 = vmatpush.msrb.mxu1 %v1034_v28  ;;  %713 = vmatpush.msrb.mxu3 %v1036_v29  ;;  %1049 = vpow2.f32 %v427_v36 }
 0x26a   : > { %v1040_v35 = vpop.eup %1039  ;;  %1051 = vpow2.f32 %v673_v37 }
 0x26b   : > { %v1042_v16 = vpop.eup %1041  ;;  %471 = vmatpush.msrb.mxu1 %v1038_v30  ;;  %714 = vmatpush.msrb.mxu3 %v1040_v35  ;;  %1053 = vpow2.f32 %v671_v45 }
 0x26c   : > { %v1044_v31 = vpop.eup %1043  ;;  %1055 = vpow2.f32 %v409_v58 }
 0x26d   : > { %v1046_v32 = vpop.eup %1045  ;;  %472 = vmatpush.msrb.mxu1 %v1042_v16  ;;  %715 = vmatpush.msrb.mxu3 %v1044_v31  ;;  %1057 = vpow2.f32 %v653_v63 }
 0x26e   : > { %v1048_v42 = vpop.eup %1047 }
 0x26f   : > { %v1050_v33 = vpop.eup %1049  ;;  %473 = vmatpush.msrb.mxu1 %v1046_v32  ;;  %716 = vmatpush.msrb.mxu3 %v1048_v42 }
 0x270   : > { %v1052_v34 = vpop.eup %1051 }
 0x271   : > { %474 = vmatpush.msrb.mxu1 %v1050_v33  ;;  %717 = vmatpush.msrb.mxu3 %v1052_v34  ;;  %v1054_v60 = vpop.eup %1053 }
 0x272   : > { %475 = vmatmul.f32.vlgmr.msrb.gmra.mxu1 %v236_v6  ;;  %v1056_v0 = vpop.eup %1055 }
 0x273   : > { %718 = vmatpush.msrb.mxu3 %v1054_v60  ;;  %v479_v1 = vmul.f32 0.0, %v1056_v0  ;;  %v1058_v54 = vpop.eup %1057 }
 0x274   : > { %719 = vmatmul.f32.vlgmr.msrb.gmra.mxu3 %v892_v39 }
 0x2ef   : > { %v476_v2 = vpop.f32.mrf.mxu1 }
 0x2f0   : > { %v480_v3 = vadd.f32 %v479_v1, %v476_v2 }
 0x2f2   : > { %v723_v4 = vmul.f32 %v1058_v54, %v480_v3 }
 0x2f7   : > { %v720_v5 = vpop.f32.mrf.mxu3 }
 0x2f8   : > { %v724_v57 = vadd.f32 %v723_v4, %v720_v5 }
 0x2fa   : > { %1059 = vrcp.f32 %v724_v57  ;;  %v736_v9 = vand.u32 2147483648, %v724_v57  ;;  %v734_v11 = vand.u32 2147483647, %v724_v57  ;;  %vm730_vm3 = vweird.f32 %v724_v57 }
 0x2fc   : > { %v737_v53 = vor.u32 1.1754944e-38, %v736_v9  ;;  %vm735_vm5 = vcmp.eq.f32.partialorder %v734_v11, 8.507059e+37 }
 0x300   : > { %v1060_v8 = vpop.eup %1059 }
 0x301   : > { %v726_v10 = vmul.f32 %v1060_v8, %v724_v57  ;;  %vm731_vm2 = vweird.f32 %v1060_v8 }
 0x302   : > { %vm732_vm4 = vmor %vm730_vm3, %vm731_vm2 }
 0x303   : > { %v727_v50 = vsub.f32 1.0, %v726_v10 }
 0x305   : > { %v728_v12 = vmul.f32 %v1060_v8, %v727_v50 }
 0x307   : > { %v729_v13 = vadd.f32 %v1060_v8, %v728_v12 }
 0x309   : > { %v733_v14 = vsel %vm732_vm4, %v1060_v8, %v729_v13 }
 0x30a   : > { %v738_v17 = vsel %vm735_vm5, %v737_v53, %v733_v14 }
 0x30b   : > { %v739_v47 = vperm.slane %v738_v17, 4 }
 0x30d   : > { %v740_v18 = vmul.f32 %v739_v47, %v724_v57 }
 0x30f   : > { %741 = vst [vmem:[%s215_s15] sm:$0xf] %v740_v18 }
 0x310   : > { %1088 = shalt.err (!%p1085_p7)
}
 0x311   : > { %919 = dma.vmem_to_hbm [thread:$0]  (%p1228_p3), %s758_s16, 64, %s760_s24, %s743_s27  }
 0x312 PF: > { %p925_p9 = scmp.ge.s32.totalorder %s1155_s19, 2  ;;  %s771_s7 = sand.u32 1, %s1127_s12  }
 0x313   : > { %s772_s10 = scalar_lea.sflag [#allocation3], %s771_s7 }
 0x314   : > { %p922_p10 = pnand %p925_p9, %p1237_p8 }
 0x316   : > { %p923_p11 = pneg %p922_p10 }
 0x318   : > { %1122 = dma.done.wait (%p923_p11), %s772_s10, 64  }
 0x319   : > { %1124 = vsyncadd (%p923_p11), %s772_s10, 4294967232  ;;  %s16_s19 = sadd.s32 1, %s1155_s19   ;;  %s1503_s12 = smov %s1131_s13 }
 0x31a   : > { %p13_p12 = scmp.ge.s32.totalorder %s16_s19, 6   ;;  %s1504_s13 = smov %s1135_s14 }
 0x31b   : > { %s1505_s14 = smov %s1246_s30  ;;  %s1506_s15 = smov %s1147_s17 }
 0x31c   : > { %s1507_s16 = smov %s1151_s18  ;;  %s1508_s17 = smov %s1511_s22 }
 0x31d   : > { %s1509_s18 = smov %s1515_s23  ;;  %15 = sbr.rel (!%p13_p12) target bundleno = 5 (0x5), region = 75 }
 0x322   :  { %778 = vsyncpa [#allocation3], 1 }
 0x323   :  { %780 = vsyncpa [#allocation3 + $0x1], 1 }

</bundles_post_ra>
